<compile_context>
chip_gen: v7x
topology: tpu7x:2x2x1
jax: 0.10.0
libtpu: 0.0.40
codegen_flags: <defaults>
</compile_context>

<pallas_src>
import jax
import jax.numpy as jnp
from jax.experimental import pallas as pl
from jax.experimental.pallas import tpu as pltpu


def _round_up(a, b):
    return (a + b - 1) // b * b


def _cdiv(a, b):
    return (a + b - 1) // b


def ffn_kernel(x_ref, w1_ref, b1_ref, w2_ref, b2_ref, o_ref):
    """One (row-tile, hid-chunk) step of  out = relu(x @ W1 + b1) @ W2 + b2."""
    k = pl.program_id(1)

    # h_k = relu(x @ W1[:, k_chunk] + b1[k_chunk])   (f32 accumulation on the MXU)
    h = jnp.dot(x_ref[...], w1_ref[...], preferred_element_type=jnp.float32)
    h = jnp.maximum(h + b1_ref[...], 0.0)
    # TODO(synk): dropout with p=0.0 (module default) is the identity; a nonzero-p
    #             training-mode dropout would mask `h` here with
    #             pltpu.prng_seed / pltpu.prng_random_bits before the second matmul.

    # Partial product for this hid chunk (cast h back to bf16 to feed the MXU).
    part = jnp.dot(h.astype(w2_ref.dtype), w2_ref[...],
                   preferred_element_type=jnp.float32)

    # Accumulate directly into the f32 output block (VMEM-resident across k):
    # first-iteration assign avoids a full-tile zero-store + extra add pass.
    @pl.when(k == 0)
    def _():
        o_ref[...] = part

    @pl.when(k > 0)
    def _():
        o_ref[...] += part

    @pl.when(k == pl.num_programs(1) - 1)
    def _():
        o_ref[...] += b2_ref[...]


def _pad_cast_2d(a, rows, cols, dtype):
    """Zero-pad a 2-D array to (rows, cols) and cast; skip copies when possible."""
    if a.shape == (rows, cols):
        return a if a.dtype == dtype else a.astype(dtype)
    out = jnp.zeros((rows, cols), dtype)
    return out.at[: a.shape[0], : a.shape[1]].set(a.astype(dtype))


def feed_forward(x, w1, b1, w2, b2, *, tile_m=None, tile_hid=None,
                 compute_dtype=jnp.bfloat16):
    """FeedForward: relu(x @ w1 + b1) @ w2 + b2.

    x: [..., d]; w1: [d, hid]; b1: [hid]; w2: [hid, d]; b2: [d].
    Returns [..., d] float32.  Pass compute_dtype=jnp.float32 for an
    exact-precision fallback (bf16 matmul inputs are the default for MXU
    throughput; accumulation and bias adds are always f32).
    """
    orig_shape = x.shape
    d = x.shape[-1]
    hid = w1.shape[1]
    x2d = x.reshape(-1, d)
    M = x2d.shape[0]

    cd_size = jnp.dtype(compute_dtype).itemsize
    sub = {4: 8, 2: 16, 1: 32}.get(cd_size, 8)   # native sublane granularity

    # Lane-dense feature padding (multiples of 128).  hid pads only to 128; the
    # reduction tile is chosen as a divisor of hid_p, never the other way round.
    d_p = _round_up(d, 128)
    hid_p = _round_up(hid, 128)

    # ---- Generation-aware tile / VMEM sizing ---------------------------------
    try:
        vmem_cap = int(pltpu.get_tpu_info().vmem_capacity_bytes)
    except Exception:                              # conservative fallback
        vmem_cap = 64 * 1024 * 1024
    small_vmem = vmem_cap < 100 * 1024 * 1024      # v7x-class (64 MiB per TC)
    budget = int(vmem_cap * 0.75)                  # leave compiler headroom
    vmem_limit = int(vmem_cap * 0.85)

    # tile_hid: largest multiple-of-128 divisor of hid_p not exceeding target.
    q = hid_p // 128
    divisors = [128 * g for g in range(1, q + 1) if q % g == 0]
    th_target = tile_hid if tile_hid is not None else (1024 if not small_vmem else 512)
    th = max(t for t in divisors if t <= max(th_target, 128))

    # tile_m: chip-dependent target (keeps arithmetic intensity above the
    # HBM/MXU ridge), clamped to the actual row count.
    tm = tile_m if tile_m is not None else (768 if not small_vmem else 384)
    tm = _round_up(max(sub, min(tm, _round_up(M, sub))), sub)

    def _footprint(tm_, th_):
        return (2 * tm_ * d_p * cd_size           # x tile (double-buffered)
                + 2 * d_p * th_ * cd_size         # W1 chunk
                + 2 * th_ * d_p * cd_size         # W2 chunk
                + 2 * (th_ + d_p) * 4             # biases
                + 2 * tm_ * d_p * 4)              # f32 output/accumulator tile

    while _footprint(tm, th) > budget and th > 128:
        th = max(t for t in divisors if t < th)
    while _footprint(tm, th) > budget and tm > sub:
        tm = max(sub, _round_up(tm // 2, sub))

    # Row-tile count: keep >= 2 row tiles on 2-TensorCore chips (v7x) so the
    # "parallel" row axis can shard across cores; row padding < sub per tile.
    n_m = _cdiv(M, tm)
    if small_vmem and n_m == 1 and M >= 2 * sub:
        n_m = 2
    tm = _round_up(_cdiv(M, n_m), sub)
    M_p = n_m * tm
    n_k = hid_p // th

    # ---- Padding / casting (skipped when shapes & dtypes already match) ------
    # TODO(synk): in a real model, pad/cast the weights once at init (or accept
    #             pre-padded weights) instead of rebuilding them per call.
    x_p = _pad_cast_2d(x2d, M_p, d_p, compute_dtype)
    w1_p = _pad_cast_2d(w1, d_p, hid_p, compute_dtype)
    w2_p = _pad_cast_2d(w2, hid_p, d_p, compute_dtype)
    b1_p = _pad_cast_2d(b1.reshape(1, -1), 1, hid_p, jnp.float32)
    b2_p = _pad_cast_2d(b2.reshape(1, -1), 1, d_p, jnp.float32)

    cost = pl.CostEstimate(
        flops=4 * M_p * d_p * hid_p,               # two matmuls, 2*M*N*K each
        transcendentals=0,
        bytes_accessed=(x_p.size + n_m * (w1_p.size + w2_p.size)) * cd_size
        + (b1_p.size + b2_p.size) * 4
        + M_p * d_p * 4,
    )

    out = pl.pallas_call(
        ffn_kernel,
        out_shape=jax.ShapeDtypeStruct((M_p, d_p), jnp.float32),
        grid_spec=pltpu.PrefetchScalarGridSpec(
            num_scalar_prefetch=0,
            grid=(n_m, n_k),                       # reduction (hid) axis last
            in_specs=[
                pl.BlockSpec((tm, d_p), lambda i, k: (i, 0)),   # x row tile
                pl.BlockSpec((d_p, th), lambda i, k: (0, k)),   # W1 hid chunk
                pl.BlockSpec((1, th), lambda i, k: (0, k)),     # b1 hid chunk
                pl.BlockSpec((th, d_p), lambda i, k: (k, 0)),   # W2 hid chunk
                pl.BlockSpec((1, d_p), lambda i, k: (0, 0)),    # b2 (constant)
            ],
            out_specs=pl.BlockSpec((tm, d_p), lambda i, k: (i, 0)),
        ),
        compiler_params=pltpu.CompilerParams(
            dimension_semantics=("parallel", "arbitrary"),
            vmem_limit_bytes=vmem_limit,
        ),
        cost_estimate=cost,
    )(x_p, w1_p, b1_p, w2_p, b2_p)

    return out[:M, :d].reshape(orig_shape)


if __name__ == "__main__":
    # Small shapes consistent with the module: d=32, hid_dim=64, batch=2, seq=8.
    d, hid_dim = 32, 64
    batch, seq = 2, 8

    key = jax.random.PRNGKey(0)
    kx, kw1, kb1, kw2, kb2 = jax.random.split(key, 5)

    x = jax.random.normal(kx, (batch, seq, d), dtype=jnp.float32)

    # Deterministic parameter init (PyTorch-Linear-like uniform bounds).
    bound1 = 1.0 / (d ** 0.5)
    bound2 = 1.0 / (hid_dim ** 0.5)
    # Stored pre-transposed: W1 is [d, hid_dim], W2 is [hid_dim, d].
    w1 = jax.random.uniform(kw1, (d, hid_dim), jnp.float32, -bound1, bound1)
    b1 = jax.random.uniform(kb1, (hid_dim,), jnp.float32, -bound1, bound1)
    w2 = jax.random.uniform(kw2, (hid_dim, d), jnp.float32, -bound2, bound2)
    b2 = jax.random.uniform(kb2, (d,), jnp.float32, -bound2, bound2)

    out = feed_forward(x, w1, b1, w2, b2)
    out = jax.block_until_ready(out)
    assert out.shape == x.shape

    # Reference with the same bf16 rounding of matmul inputs (tight check).
    xb = x.reshape(-1, d).astype(jnp.bfloat16).astype(jnp.float32)
    w1b = w1.astype(jnp.bfloat16).astype(jnp.float32)
    w2b = w2.astype(jnp.bfloat16).astype(jnp.float32)
    h_ref = jnp.maximum(xb @ w1b + b1, 0.0).astype(jnp.bfloat16).astype(jnp.float32)
    ref_bf16 = (h_ref @ w2b + b2).reshape(x.shape)
    assert jnp.allclose(out, ref_bf16, atol=5e-3, rtol=5e-3)

    # Loose sanity check against the pure-f32 module math.
    ref_f32 = jnp.maximum(x @ w1 + b1, 0.0) @ w2 + b2
    assert jnp.allclose(out, ref_f32, atol=1e-1, rtol=1e-1)

    print("KERNEL_OK")
</pallas_src>

<mosaic_0001>
module attributes {stable_mosaic.version = 11 : i64} {
  func.func @ffn_kernel(%arg0: i32, %arg1: i32, %arg2: memref<16x128xbf16, #tpu.memory_space<vmem>>, %arg3: memref<128x128xbf16, #tpu.memory_space<vmem>>, %arg4: memref<1x128xf32, #tpu.memory_space<vmem>>, %arg5: memref<128x128xbf16, #tpu.memory_space<vmem>>, %arg6: memref<1x128xf32, #tpu.memory_space<vmem>>, %arg7: memref<16x128xf32, #tpu.memory_space<vmem>>) attributes {dimension_semantics = [#tpu.dimension_semantics<parallel>, #tpu.dimension_semantics<arbitrary>], iteration_bounds = array<i64: 1, 1>, scalar_prefetch = 0 : i64, scratch_operands = 0 : i64, tpu.core_type = #tpu.core_type<tc>, window_params = [{transform_indices = @transform_0, window_bounds = array<i64: 16, 128>}, {transform_indices = @transform_1, window_bounds = array<i64: 128, 128>}, {transform_indices = @transform_2, window_bounds = array<i64: 1, 128>}, {transform_indices = @transform_3, window_bounds = array<i64: 128, 128>}, {pipeline_mode = #tpu.pipeline_mode<synchronous>, transform_indices = @transform_4, window_bounds = array<i64: 1, 128>}, {transform_indices = @transform_5, window_bounds = array<i64: 16, 128>}]} {
    %c0 = arith.constant 0 : index
    %c0_0 = arith.constant 0 : index
    %0 = vector.load %arg2[%c0, %c0_0] : memref<16x128xbf16, #tpu.memory_space<vmem>>, vector<16x128xbf16>
    %c0_1 = arith.constant 0 : index
    %c0_2 = arith.constant 0 : index
    %1 = vector.load %arg3[%c0_1, %c0_2] : memref<128x128xbf16, #tpu.memory_space<vmem>>, vector<128x128xbf16>
    %cst = arith.constant dense<0.000000e+00> : vector<16x128xf32>
    %2 = tpu.matmul %0, %1, %cst {dimension_numbers = #tpu.dot_dimension_numbers<[1], [0], [0], [1], [0, 0, 1, 1], [], []>} : vector<16x128xbf16>, vector<128x128xbf16>, vector<16x128xf32> -> vector<16x128xf32>
    %c0_3 = arith.constant 0 : index
    %c0_4 = arith.constant 0 : index
    %3 = vector.load %arg4[%c0_3, %c0_4] : memref<1x128xf32, #tpu.memory_space<vmem>>, vector<1x128xf32>
    %4 = vector.broadcast %3 : vector<1x128xf32> to vector<16x128xf32>
    %5 = arith.addf %2, %4 : vector<16x128xf32>
    %cst_5 = arith.constant 0.000000e+00 : f32
    %6 = vector.broadcast %cst_5 : f32 to vector<16x128xf32>
    %7 = arith.maximumf %5, %6 : vector<16x128xf32>
    %8 = arith.truncf %7 : vector<16x128xf32> to vector<16x128xbf16>
    %c0_6 = arith.constant 0 : index
    %c0_7 = arith.constant 0 : index
    %9 = vector.load %arg5[%c0_6, %c0_7] : memref<128x128xbf16, #tpu.memory_space<vmem>>, vector<128x128xbf16>
    %cst_8 = arith.constant dense<0.000000e+00> : vector<16x128xf32>
    %10 = tpu.matmul %8, %9, %cst_8 {dimension_numbers = #tpu.dot_dimension_numbers<[1], [0], [0], [1], [0, 0, 1, 1], [], []>} : vector<16x128xbf16>, vector<128x128xbf16>, vector<16x128xf32> -> vector<16x128xf32>
    %c0_i32 = arith.constant 0 : i32
    %11 = arith.cmpi eq, %arg1, %c0_i32 : i32
    %12 = arith.extui %11 : i1 to i32
    %c0_i32_9 = arith.constant 0 : i32
    %13 = arith.cmpi ne, %12, %c0_i32_9 : i32
    scf.if %13 {
      %c0_14 = arith.constant 0 : index
      %c0_15 = arith.constant 0 : index
      %20 = vector.load %arg7[%c0_14, %c0_15] : memref<16x128xf32, #tpu.memory_space<vmem>>, vector<16x128xf32>
      tpu.vector_store %arg7[%c0_14, %c0_15], %10 {strides = array<i32>} : memref<16x128xf32, #tpu.memory_space<vmem>>, vector<16x128xf32>,
    } else {
    }
    %c0_i32_10 = arith.constant 0 : i32
    %14 = arith.cmpi sgt, %arg1, %c0_i32_10 : i32
    %15 = arith.extui %14 : i1 to i32
    %c0_i32_11 = arith.constant 0 : i32
    %16 = arith.cmpi ne, %15, %c0_i32_11 : i32
    scf.if %16 {
      %c0_14 = arith.constant 0 : index
      %c0_15 = arith.constant 0 : index
      %20 = vector.load %arg7[%c0_14, %c0_15] : memref<16x128xf32, #tpu.memory_space<vmem>>, vector<16x128xf32>
      %21 = arith.addf %20, %10 : vector<16x128xf32>
      %c0_16 = arith.constant 0 : index
      %c0_17 = arith.constant 0 : index
      %22 = vector.load %arg7[%c0_16, %c0_17] : memref<16x128xf32, #tpu.memory_space<vmem>>, vector<16x128xf32>
      tpu.vector_store %arg7[%c0_16, %c0_17], %21 {strides = array<i32>} : memref<16x128xf32, #tpu.memory_space<vmem>>, vector<16x128xf32>,
    } else {
    }
    %c0_i32_12 = arith.constant 0 : i32
    %17 = arith.cmpi eq, %arg1, %c0_i32_12 : i32
    %18 = arith.extui %17 : i1 to i32
    %c0_i32_13 = arith.constant 0 : i32
    %19 = arith.cmpi ne, %18, %c0_i32_13 : i32
    scf.if %19 {
      %c0_14 = arith.constant 0 : index
      %c0_15 = arith.constant 0 : index
      %20 = vector.load %arg7[%c0_14, %c0_15] : memref<16x128xf32, #tpu.memory_space<vmem>>, vector<16x128xf32>
      %c0_16 = arith.constant 0 : index
      %c0_17 = arith.constant 0 : index
      %21 = vector.load %arg6[%c0_16, %c0_17] : memref<1x128xf32, #tpu.memory_space<vmem>>, vector<1x128xf32>
      %22 = vector.broadcast %21 : vector<1x128xf32> to vector<16x128xf32>
      %23 = arith.addf %20, %22 : vector<16x128xf32>
      %c0_18 = arith.constant 0 : index
      %c0_19 = arith.constant 0 : index
      %24 = vector.load %arg7[%c0_18, %c0_19] : memref<16x128xf32, #tpu.memory_space<vmem>>, vector<16x128xf32>
      tpu.vector_store %arg7[%c0_18, %c0_19], %23 {strides = array<i32>} : memref<16x128xf32, #tpu.memory_space<vmem>>, vector<16x128xf32>,
    } else {
    }
    return
  }
  func.func @transform_0(%arg0: i32, %arg1: i32) -> (i32, i32) {
    %c0_i32 = arith.constant 0 : i32
    %c0_i32_0 = arith.constant 0 : i32
    return %arg0, %c0_i32 : i32, i32
  }
  func.func @transform_1(%arg0: i32, %arg1: i32) -> (i32, i32) {
    %c0_i32 = arith.constant 0 : i32
    %c0_i32_0 = arith.constant 0 : i32
    return %c0_i32, %arg1 : i32, i32
  }
  func.func @transform_2(%arg0: i32, %arg1: i32) -> (i32, i32) {
    %c0_i32 = arith.constant 0 : i32
    %c0_i32_0 = arith.constant 0 : i32
    return %c0_i32, %arg1 : i32, i32
  }
  func.func @transform_3(%arg0: i32, %arg1: i32) -> (i32, i32) {
    %c0_i32 = arith.constant 0 : i32
    %c0_i32_0 = arith.constant 0 : i32
    return %arg1, %c0_i32 : i32, i32
  }
  func.func @transform_4(%arg0: i32, %arg1: i32) -> (i32, i32) {
    %c0_i32 = arith.constant 0 : i32
    %c0_i32_0 = arith.constant 0 : i32
    %c0_i32_1 = arith.constant 0 : i32
    return %c0_i32, %c0_i32_0 : i32, i32
  }
  func.func @transform_5(%arg0: i32, %arg1: i32) -> (i32, i32) {
    %c0_i32 = arith.constant 0 : i32
    %c0_i32_0 = arith.constant 0 : i32
    return %arg0, %c0_i32 : i32, i32
  }
}

</mosaic_0001>

<bundles_post_ra>
// kernel: tpu_custom_call.1
= control target key start
LH: loop header
LB: loop body
LE: loop exit
PB: predicated region body
PF: predicated region fallthrough
CT: control target
= control target key end

     0   :  { %10 = vsyncpa [#allocation3], 0  ;;  %s649_s0 = inlined_call_operand.hbm [shape: bf16[16,128], index: 0, kind: input, shape index: {}]   ;;  %s650_s1 = inlined_call_operand.hbm [shape: bf16[128,128], index: 1, kind: input, shape index: {}]   ;;  %s651_s2 = inlined_call_operand.vmem [shape: f32[1,128], index: 2, kind: input, shape index: {}]   ;;  %s652_s3 = inlined_call_operand.hbm [shape: bf16[128,128], index: 3, kind: input, shape index: {}]   ;;  %s653_s4 = inlined_call_operand.vmem [shape: f32[1,128], index: 4, kind: input, shape index: {}]   ;;  %s654_s5 = inlined_call_operand.hbm [shape: f32[16,128], index: 5, kind: output, shape index: {}]  }
   0x1   :  { %11 = vsyncpa [#allocation6], 0 }
   0x2   :  { %12 = vsyncpa [#allocation4], 0  ;;  %s539_s18 = smov [#allocation5]   ;;  %s540_s20 = smov [#allocation2]  }
   0x3   :  { %s30_s19 = sshll.u32 %s539_s18, 4  ;;  %s18_s21 = sshll.u32 %s540_s20, 4  ;;  %s31_s19 = int_to_ptr.vmem [resolvable:$true] %s30_s19  ;;  %s579_s21 = int_to_ptr.vmem [resolvable:$true] %s18_s21 }
   0x4   :  { %s445_s24 = scalar_lea.hbm %s650_s1, 1024 }
   0x5   :  { %p446_p0 = scmp.ne.s32.totalorder %s650_s1, %s445_s24  ;;  %p449_p1 = scmp.lt.u32.totalorder %s445_s24, %s650_s1 }
   0x7   :  { %p451_p2 = pnand %p449_p1, %p446_p0 }
   0x9   :  { %454 = shalt.err (!%p451_p2)
}
   0xa   :  { %s455_s29 = scalar_lea.vmem %s31_s19, 1024  ;;  %p460_p4 = scmp.lt.s32.totalorder %s31_s19, %s31_s19 }
   0xb   :  { %p456_p3 = scmp.ne.s32.totalorder %s31_s19, %s455_s29  ;;  %p461_p5 = scmp.lt.s32.totalorder %s455_s29, %s455_s29 }
   0xd   :  { %p462_p6 = por %p461_p5, %p460_p4 }
   0xf   :  { %p463_p7 = pnand %p462_p6, %p456_p3 }
  0x11   :  { %466 = shalt.err (!%p463_p7)
}
  0x12   :  { %s541_s30 = smov 64   ;;  %s542_s6 = smov 4  }
  0x13   :  { %36 = dma.hbm_to_vmem [thread:$0]  %s650_s1, 1024, %s31_s19, [#allocation6], %s541_s30, %s541_s30, %s542_s6  }
  0x14   :  { %s467_s11 = scalar_lea.hbm %s649_s0, 128 }
  0x15   :  { %p468_p8 = scmp.ne.s32.totalorder %s649_s0, %s467_s11  ;;  %p471_p9 = scmp.lt.u32.totalorder %s467_s11, %s649_s0 }
  0x17   :  { %p473_p10 = pnand %p471_p9, %p468_p8 }
  0x19   :  { %476 = shalt.err (!%p473_p10)
}
  0x1a   :  { %s477_s16 = scalar_lea.vmem %s579_s21, 128  ;;  %p482_p12 = scmp.lt.s32.totalorder %s579_s21, %s579_s21 }
  0x1b   :  { %p478_p11 = scmp.ne.s32.totalorder %s579_s21, %s477_s16  ;;  %p483_p13 = scmp.lt.s32.totalorder %s477_s16, %s477_s16 }
  0x1d   :  { %p484_p0 = por %p483_p13, %p482_p12 }
  0x1f   :  { %p485_p1 = pnand %p484_p0, %p478_p11 }
  0x21   :  { %488 = shalt.err (!%p485_p1)
}
  0x22   :  { %24 = dma.hbm_to_vmem [thread:$0]  %s649_s0, 128, %s579_s21, [#allocation3], %s541_s30, %s541_s30, %s542_s6  }
  0x23   :  { %s543_s18 = smov [#allocation7]   ;;  %s489_s23 = scalar_lea.hbm %s652_s3, 1024 }
  0x24   :  { %s44_s19 = sshll.u32 %s543_s18, 4  ;;  %p490_p2 = scmp.ne.s32.totalorder %s652_s3, %s489_s23  ;;  %s45_s19 = int_to_ptr.vmem [resolvable:$true] %s44_s19 }
  0x25   :  { %p493_p3 = scmp.lt.u32.totalorder %s489_s23, %s652_s3 }
  0x27   :  { %p495_p4 = pnand %p493_p3, %p490_p2 }
  0x29   :  { %498 = shalt.err (!%p495_p4)
}
  0x2a   :  { %s499_s28 = scalar_lea.vmem %s45_s19, 1024  ;;  %p504_p6 = scmp.lt.s32.totalorder %s45_s19, %s45_s19 }
  0x2b   :  { %p500_p5 = scmp.ne.s32.totalorder %s45_s19, %s499_s28  ;;  %p505_p7 = scmp.lt.s32.totalorder %s499_s28, %s499_s28 }
  0x2d   :  { %p506_p8 = por %p505_p7, %p504_p6 }
  0x2f   :  { %p507_p9 = pnand %p506_p8, %p500_p5 }
  0x31   :  { %510 = shalt.err (!%p507_p9)
}
  0x32   :  { %50 = dma.hbm_to_vmem [thread:$0]  %s652_s3, 1024, %s45_s19, [#allocation6], %s541_s30, %s541_s30, %s542_s6  }
  0x33   :  { %533 = dma.done.wait [#allocation3], 128  }
  0x34   :  { %534 = vsyncadd [#allocation3], 4294967168 }
  0x35   :  { %535 = dma.done.wait [#allocation6], 2048  }
  0x36   :  { %536 = vsyncadd [#allocation6], 4294965248  ;;  %v544_v0 = vmov 0.0   ;;  %vm545_vm0 = vmmov 0   ;;  %v428_v1 = vld [vmem:[#allocation5] sm:$0xff]   ;;  %v429_v2 = vld [vmem:[#allocation5 + $0x8] sm:$0xff]  }
  0x37   :  { %378 = vmatprep.subr.bf16.mxu0 %v544_v0  ;;  %394 = vmatprep.mubr.msk.bf16.mxu0 %vm545_vm0, %v544_v0  ;;  %v430_v3 = vld [vmem:[#allocation5 + $0x10] sm:$0xff]   ;;  %v437_v4 = vld [vmem:[#allocation7] sm:$0xff]   ;;  %v431_v5 = vld [vmem:[#allocation5 + $0x18] sm:$0xff]   ;;  %s546_s7 = smov [#allocation8]  }
  0x38   :  { %398 = vmatprep.subr.bf16.mxu1 %v544_v0  ;;  %414 = vmatprep.mubr.msk.bf16.mxu1 %vm545_vm0, %v544_v0  ;;  %v438_v6 = vld [vmem:[#allocation7 + $0x8] sm:$0xff]   ;;  %v432_v7 = vld [vmem:[#allocation5 + $0x20] sm:$0xff]   ;;  %v439_v8 = vld [vmem:[#allocation7 + $0x10] sm:$0xff]   ;;  %s328_s8 = sshll.u32 %s546_s7, 4  ;;  %s329_s8 = int_to_ptr.vmem [resolvable:$true] %s328_s8 }
  0x39   :  { %379 = vmatpush3.bf16.msra.mxu0 %v428_v1  ;;  %399 = vmatpush3.bf16.msra.mxu1 %v437_v4  ;;  %v433_v9 = vld [vmem:[#allocation5 + $0x28] sm:$0xff]   ;;  %v440_v10 = vld [vmem:[#allocation7 + $0x18] sm:$0xff]   ;;  %v434_v11 = vld [vmem:[#allocation5 + $0x30] sm:$0xff]   ;;  %p516_p11 = scmp.lt.s32.totalorder %s329_s8, %s329_s8 }
  0x3a   :  { %380 = vmatprep.subr.bf16.mxu0 %v544_v0  ;;  %400 = vmatprep.subr.bf16.mxu1 %v544_v0  ;;  %v441_v12 = vld [vmem:[#allocation7 + $0x20] sm:$0xff]   ;;  %v435_v13 = vld [vmem:[#allocation5 + $0x38] sm:$0xff]   ;;  %v442_v14 = vld [vmem:[#allocation7 + $0x28] sm:$0xff]  }
  0x3b   :  { %v436_v15 = vld [vmem:[#allocation2] sm:$0xff]   ;;  %v443_v16 = vld [vmem:[#allocation7 + $0x30] sm:$0xff]  }
  0x3c   :  { %v444_v17 = vld [vmem:[#allocation7 + $0x38] sm:$0xff]  }
  0x3d   :  { %381 = vmatpush3.bf16.msra.mxu0 %v429_v2  ;;  %401 = vmatpush3.bf16.msra.mxu1 %v438_v6  ;;  %v341_v18 = vld [vmem:[%s651_s2] ss:$0 sm:$0xff]  ;;  %s511_s2 = scalar_lea.vmem %s329_s8, 256 }
  0x3e   :  { %382 = vmatprep.subr.bf16.mxu0 %v544_v0  ;;  %402 = vmatprep.subr.bf16.mxu1 %v544_v0  ;;  %v359_v28 = vld [vmem:[%s653_s4] ss:$0 sm:$0xff]  ;;  %p512_p10 = scmp.ne.s32.totalorder %s329_s8, %s511_s2  ;;  %p517_p12 = scmp.lt.s32.totalorder %s511_s2, %s511_s2 }
  0x40   :  { %p518_p13 = por %p517_p12, %p516_p11 }
  0x41   :  { %383 = vmatpush3.bf16.msra.mxu0 %v430_v3  ;;  %403 = vmatpush3.bf16.msra.mxu1 %v439_v8 }
  0x42   :  { %384 = vmatprep.subr.bf16.mxu0 %v544_v0  ;;  %404 = vmatprep.subr.bf16.mxu1 %v544_v0  ;;  %p519_p0 = pnand %p518_p13, %p512_p10 }
  0x45   :  { %385 = vmatpush3.bf16.msra.mxu0 %v431_v5  ;;  %405 = vmatpush3.bf16.msra.mxu1 %v440_v10 }
  0x46   :  { %386 = vmatprep.subr.bf16.mxu0 %v544_v0  ;;  %406 = vmatprep.subr.bf16.mxu1 %v544_v0 }
  0x49   :  { %387 = vmatpush3.bf16.msra.mxu0 %v432_v7  ;;  %407 = vmatpush3.bf16.msra.mxu1 %v441_v12 }
  0x4a   :  { %388 = vmatprep.subr.bf16.mxu0 %v544_v0  ;;  %408 = vmatprep.subr.bf16.mxu1 %v544_v0 }
  0x4d   :  { %389 = vmatpush3.bf16.msra.mxu0 %v433_v9  ;;  %409 = vmatpush3.bf16.msra.mxu1 %v442_v14 }
  0x4e   :  { %390 = vmatprep.subr.bf16.mxu0 %v544_v0  ;;  %410 = vmatprep.subr.bf16.mxu1 %v544_v0 }
  0x51   :  { %391 = vmatpush3.bf16.msra.mxu0 %v434_v11  ;;  %411 = vmatpush3.bf16.msra.mxu1 %v443_v16 }
  0x52   :  { %392 = vmatprep.subr.bf16.mxu0 %v544_v0  ;;  %412 = vmatprep.subr.bf16.mxu1 %v544_v0 }
  0x55   :  { %393 = vmatpush3.bf16.msra.mxu0 %v435_v13  ;;  %413 = vmatpush3.bf16.msra.mxu1 %v444_v17 }
  0x58   :  { %395 = vmatmul.mubr.bf16.vlgmr.msra.gmra.mrb[0].mxu0 %v436_v15 }
 0x12b   :  { %v176_v19 = vpop.f32.mrb[0].mxu0 }
 0x12c   :  { %v177_v20 = vadd.f32 %v341_v18, %v176_v19  ;;  %v396_v21 = vpop.f32.mrb[1].mxu0 }
 0x12d   :  { %v179_v22 = vpop.f32.mrb[2].mxu0 }
 0x12e   :  { %v180_v23 = vadd.f32 %v341_v18, %v179_v22  ;;  %v397_v24 = vpop.f32.mrb[3].mxu0  ;;  %v183_v25 = vmax.f32 %v177_v20, 0.0 }
 0x130   :  { %v184_v26 = vmax.f32 %v180_v23, 0.0 }
 0x132   :  { %v185_v27 = vpack.c.bf16 %v184_v26, %v183_v25 }
 0x134   :  { %415 = vmatmul.mubr.bf16.vlgmr.msra.gmra.mrb[0].mxu1 %v185_v27 }
 0x207   :  { %v284_v29 = vpop.f32.mrb[0].mxu1 }
 0x208   :  { %v319_v30 = vadd.f32 %v359_v28, %v284_v29  ;;  %v416_v31 = vpop.f32.mrb[1].mxu1 }
 0x209   :  { %v287_v32 = vpop.f32.mrb[2].mxu1 }
 0x20a   :  { %321 = vst [vmem:[#allocation8] sm:$0xff] %v319_v30  ;;  %v320_v33 = vadd.f32 %v359_v28, %v287_v32  ;;  %v417_v34 = vpop.f32.mrb[3].mxu1 }
 0x20c   :  { %322 = vst [vmem:[#allocation8 + $0x8] sm:$0xff] %v320_v33 }
 0x20d   :  { %522 = shalt.err (!%p519_p0)
}
 0x20e   :  { %s523_s10 = scalar_lea.hbm %s654_s5, 256 }
 0x20f   :  { %p524_p1 = scmp.ne.s32.totalorder %s654_s5, %s523_s10  ;;  %p527_p2 = scmp.lt.u32.totalorder %s523_s10, %s654_s5 }
 0x211   :  { %p529_p3 = pnand %p527_p2, %p524_p1 }
 0x213   :  { %532 = shalt.err (!%p529_p3)
}
 0x214   :  { %s547_s15 = smov 128   ;;  %s548_s16 = smov 8  }
 0x215   :  { %334 = dma.vmem_to_hbm [thread:$0]  %s329_s8, 256, %s654_s5, [#allocation4], %s547_s15, %s547_s15, %s548_s16  }
 0x216   :  { %537 = dma.done.wait [#allocation4], 256  }
 0x217   :  { %538 = vsyncadd [#allocation4], 4294967040 }
 0x218   :  { %338 = vsyncpa [#allocation3], 1 }
 0x219   :  { %339 = vsyncpa [#allocation6], 1 }
 0x21a   :  { %340 = vsyncpa [#allocation4], 1 }

</bundles_post_ra>
